<compile_context>
chip_gen: v6e
topology: v6e:2x2x1
jax: 0.10.0
libtpu: 0.0.40
codegen_flags: <defaults>
</compile_context>

<pallas_src>
import functools

import jax
import jax.numpy as jnp
from jax import lax
from jax.experimental import pallas as pl
from jax.experimental.pallas import tpu as pltpu


# ---------------- model hyperparameters (match the module defaults) ----------
VOCAB_SIZE = 65
N_EMB = 32
BLOCK_SIZE = 8
NUM_HEADS = 4
HEAD_SIZE = N_EMB // NUM_HEADS      # 8
VOCAB_PAD = 128                     # lane-dense width: padded vocab / one-hot / fused qkv
MAX_BATCH_BLOCK = 1024              # batch elements folded into one grid step


def _model_kernel(idx_ref, pos_ref, tab_ref, wqkv_ref, wff_ref, bff_ref,
                  wlm_ref, blm_ref, out_ref, *, num_heads, head_size):
    """One grid step = one block of BB batch elements.

    idx_ref : (BB, T)    int32 token ids for this batch block
    pos_ref : (T, C)     f32 position embeddings
    tab_ref : (Vp, C)    bf16 token-embedding table, rows padded 65 -> 128
    wqkv_ref: (C, Vp)    bf16 fused [Wq*hs^-0.5 | Wk | Wv] padded 96 -> 128 lanes
    wff_ref : (H, hs, C) bf16 feed-forward weight split by head row-block
    bff_ref : (1, C)     f32
    wlm_ref : (C, Vp)    bf16 lm_head weight, vocab padded to 128 lanes
    blm_ref : (1, Vp)    f32 lm_head bias; pad columns hold -1e30
    out_ref : (BB, T, Vp) padded logits (bf16 by default)
    """
    BB, T = idx_ref.shape
    C = pos_ref.shape[-1]
    Vp = out_ref.shape[-1]
    H, hs = num_heads, head_size

    # ---- token embedding gather as a one-hot MXU matmul (no pre-gathered f32 in HBM) ----
    ids = idx_ref[...]                                             # (BB, T) int32
    iota_v = lax.broadcasted_iota(jnp.int32, (BB, T, Vp), 2)
    onehot = jnp.where(iota_v == ids[:, :, None], 1.0, 0.0)
    onehot = onehot.astype(jnp.bfloat16).reshape(BB * T, Vp)       # (BB*T, 128)
    tok = jnp.dot(onehot, tab_ref[...],
                  preferred_element_type=jnp.float32)              # (BB*T, C) f32

    x = tok.reshape(BB, T, C) + pos_ref[...]                       # broadcast pos over batch
    x2 = x.reshape(BB * T, C).astype(jnp.bfloat16)

    # ---- fused QKV projection (single lane-full matmul; scale pre-folded into q cols) ----
    qkv = jnp.dot(x2, wqkv_ref[...],
                  preferred_element_type=jnp.float32)              # (BB*T, 128) f32
    qkv = qkv.astype(jnp.bfloat16)                                 # cols: q[0:C] k[C:2C] v[2C:3C]

    # ---- hoisted additive causal mask (built once per grid step) ----
    row = lax.broadcasted_iota(jnp.int32, (T, T), 0)
    col = lax.broadcasted_iota(jnp.int32, (T, T), 1)
    mask_bias = jnp.where(col <= row, 0.0, -1e30).astype(jnp.float32)[None]   # (1, T, T)

    # ---- multi-head causal attention; head concat folded into the FF matmul ----
    # TODO(synk): batch-on-lanes / merged-head softmax layout (review items 5/6) deferred.
    acc = jnp.zeros((BB * T, C), jnp.float32)
    for h in range(H):                                             # static 4-way unroll
        qh = qkv[:, h * hs:(h + 1) * hs].reshape(BB, T, hs)
        kh = qkv[:, C + h * hs:C + (h + 1) * hs].reshape(BB, T, hs)
        vh = qkv[:, 2 * C + h * hs:2 * C + (h + 1) * hs].reshape(BB, T, hs)

        wei = jnp.einsum('bqd,bkd->bqk', qh, kh,
                         preferred_element_type=jnp.float32)       # (BB, T, T) f32
        wei = wei + mask_bias
        wei = wei - jnp.max(wei, axis=-1, keepdims=True)
        p = jnp.exp(wei)
        p = p * pl.reciprocal(jnp.sum(p, axis=-1, keepdims=True), approx=True)

        sah = jnp.einsum('bqk,bkd->bqd', p.astype(jnp.bfloat16), vh,
                         preferred_element_type=jnp.float32)       # (BB, T, hs)

        # sa_concat @ Wff == sum_h sa_h @ Wff[h*hs:(h+1)*hs, :]  (no concatenate needed)
        acc = acc + jnp.dot(sah.reshape(BB * T, hs).astype(jnp.bfloat16), wff_ref[h],
                            preferred_element_type=jnp.float32)

    # ---- FeedForward: Linear + ReLU (f32 accumulate, bf16 for the next matmul) ----
    hmid = jnp.maximum(acc + bff_ref[...], 0.0).astype(jnp.bfloat16)   # (BB*T, C)

    # ---- lm_head (vocab padded to 128 lanes; pad columns get -1e30 bias) ----
    logits = jnp.dot(hmid, wlm_ref[...],
                     preferred_element_type=jnp.float32) + blm_ref[...]
    out_ref[...] = logits.reshape(BB, T, Vp).astype(out_ref.dtype)


def bigram_attention_forward_padded(idx, params, *, logits_dtype=jnp.bfloat16):
    """Optimized forward. Returns (B, T, VOCAB_PAD) logits; pad vocab columns ~= -1e30
    (softmax / cross-entropy safe), so no post-kernel vocab slice is needed."""
    B, T = idx.shape
    C, V, Vp = N_EMB, VOCAB_SIZE, VOCAB_PAD
    H, hs = NUM_HEADS, HEAD_SIZE

    idx = idx.astype(jnp.int32)
    pos = params["pos_table"][:T].astype(jnp.float32)                          # (T, C)
    tab = jnp.pad(params["tok_table"], ((0, Vp - V), (0, 0))).astype(jnp.bfloat16)  # (128, C)

    # Fused QKV weight: [Wq * hs^-0.5 | Wk | Wv], padded to 128 lanes (scale folded once).
    scale = jnp.float32(hs) ** -0.5
    w_qkv = jnp.concatenate([params["wq"] * scale, params["wk"], params["wv"]], axis=1)
    w_qkv = jnp.pad(w_qkv, ((0, 0), (0, Vp - 3 * C))).astype(jnp.bfloat16)     # (C, 128)

    w_ff = params["wff"].reshape(H, hs, C).astype(jnp.bfloat16)                # (H, hs, C)
    b_ff = params["bff"].astype(jnp.float32)                                   # (1, C)

    w_lm = jnp.pad(params["wlm"], ((0, 0), (0, Vp - V))).astype(jnp.bfloat16)  # (C, 128)
    b_lm = jnp.pad(params["blm"].astype(jnp.float32), ((0, 0), (0, Vp - V)),
                   constant_values=-1e30)                                      # (1, 128)

    # Batch blocking: big blocks, but keep >=2 grid steps when B allows so the "parallel"
    # axis can split across v7x's two TensorCores.  Pad B to a multiple of BB.
    if B >= 16:
        BB = min(MAX_BATCH_BLOCK, ((pl.cdiv(B, 2) + 7) // 8) * 8)
    else:
        BB = B
    n_blocks = pl.cdiv(B, BB)
    B_pad = n_blocks * BB
    if B_pad != B:
        idx = jnp.pad(idx, ((0, B_pad - B), (0, 0)))     # pad rows use token id 0; dropped below

    kernel = functools.partial(_model_kernel, num_heads=H, head_size=hs)

    flops = (2 * B_pad * T * (Vp * C + C * 3 * C + C * C + C * Vp)
             + 4 * B_pad * H * T * T * hs)
    bytes_accessed = (idx.size * 4 + tab.size * 2 + pos.size * 4
                      + w_qkv.size * 2 + w_ff.size * 2 + b_ff.size * 4
                      + w_lm.size * 2 + b_lm.size * 4
                      + B_pad * T * Vp * jnp.dtype(logits_dtype).itemsize)
    cost = pl.CostEstimate(flops=flops,
                           transcendentals=B_pad * H * T * T,
                           bytes_accessed=bytes_accessed)

    logits_pad = pl.pallas_call(
        kernel,
        out_shape=jax.ShapeDtypeStruct((B_pad, T, Vp), logits_dtype),
        grid_spec=pltpu.PrefetchScalarGridSpec(
            num_scalar_prefetch=0,
            grid=(n_blocks,),
            in_specs=[
                pl.BlockSpec((BB, T), lambda b: (b, 0)),         # idx (int32)
                pl.BlockSpec((T, C), lambda b: (0, 0)),          # pos_emb
                pl.BlockSpec((Vp, C), lambda b: (0, 0)),         # padded token table
                pl.BlockSpec((C, Vp), lambda b: (0, 0)),         # fused W_qkv (padded)
                pl.BlockSpec((H, hs, C), lambda b: (0, 0, 0)),   # W_ff (per-head row blocks)
                pl.BlockSpec((1, C), lambda b: (0, 0)),          # b_ff
                pl.BlockSpec((C, Vp), lambda b: (0, 0)),         # W_lm (padded)
                pl.BlockSpec((1, Vp), lambda b: (0, 0)),         # b_lm (padded, -1e30)
            ],
            out_specs=pl.BlockSpec((BB, T, Vp), lambda b: (b, 0, 0)),
        ),
        compiler_params=pltpu.CompilerParams(
            dimension_semantics=("parallel",),           # batch blocks are independent
            vmem_limit_bytes=48 * 1024 * 1024,           # safe on v7x's 64 MiB VMEM
        ),
        cost_estimate=cost,
    )(idx, pos, tab, w_qkv, w_ff, b_ff, w_lm, b_lm)

    if B_pad != B:                       # conditional: no extra copy when B is block-aligned
        logits_pad = logits_pad[:B]
    return logits_pad


def bigram_attention_forward(idx, params, targets=None, *, logits_dtype=jnp.bfloat16):
    """API-compatible forward: returns (logits[B, T, vocab], None) like the torch module
    with targets=None.  Prefer `bigram_attention_forward_padded` downstream to avoid the
    vocab slice (the pad columns already carry a -1e30 bias)."""
    assert targets is None, "TODO(synk): in-kernel cross_entropy (targets path) not implemented"
    logits_pad = bigram_attention_forward_padded(idx, params, logits_dtype=logits_dtype)
    logits = logits_pad[..., :VOCAB_SIZE]
    return logits, None


def init_params(key):
    """Deterministic synthetic parameter init (shapes from the module __init__).
    All dense weights are stored (in, out); q/k/v/ff columns/rows are head-major."""
    ks = jax.random.split(key, 9)
    s = 0.02
    return {
        "tok_table": jax.random.normal(ks[0], (VOCAB_SIZE, N_EMB), jnp.float32) * s,
        "pos_table": jax.random.normal(ks[1], (BLOCK_SIZE, N_EMB), jnp.float32) * s,
        "wq": jax.random.normal(ks[2], (N_EMB, N_EMB), jnp.float32) * s,
        "wk": jax.random.normal(ks[3], (N_EMB, N_EMB), jnp.float32) * s,
        "wv": jax.random.normal(ks[4], (N_EMB, N_EMB), jnp.float32) * s,
        "wff": jax.random.normal(ks[5], (N_EMB, N_EMB), jnp.float32) * s,
        "bff": jax.random.normal(ks[6], (1, N_EMB), jnp.float32) * s,
        "wlm": jax.random.normal(ks[7], (N_EMB, VOCAB_SIZE), jnp.float32) * s,
        "blm": jax.random.normal(ks[8], (1, VOCAB_SIZE), jnp.float32) * s,
    }


if __name__ == "__main__":
    key = jax.random.PRNGKey(0)
    pkey, ikey = jax.random.split(key)
    params = init_params(pkey)

    B, T = 2, BLOCK_SIZE                                # small demo shapes: batch=2, seq=8
    idx = jax.random.randint(ikey, (B, T), 0, VOCAB_SIZE, dtype=jnp.int32)

    logits, loss = bigram_attention_forward(idx, params)
    logits = jax.block_until_ready(logits)

    assert logits.shape == (B, T, VOCAB_SIZE)
    assert loss is None
    assert bool(jnp.all(jnp.isfinite(logits.astype(jnp.float32))))
    print("KERNEL_OK")
</pallas_src>

<mosaic_0001>
module attributes {stable_mosaic.version = 11 : i64} {
  func.func @_model_kernel(%arg0: i32, %arg1: memref<2x8xi32, #tpu.memory_space<vmem>>, %arg2: memref<8x32xf32, #tpu.memory_space<vmem>>, %arg3: memref<128x32xbf16, #tpu.memory_space<vmem>>, %arg4: memref<32x128xbf16, #tpu.memory_space<vmem>>, %arg5: memref<4x8x32xbf16, #tpu.memory_space<vmem>>, %arg6: memref<1x32xf32, #tpu.memory_space<vmem>>, %arg7: memref<32x128xbf16, #tpu.memory_space<vmem>>, %arg8: memref<1x128xf32, #tpu.memory_space<vmem>>, %arg9: memref<2x8x128xbf16, #tpu.memory_space<vmem>>) attributes {dimension_semantics = [#tpu.dimension_semantics<parallel>], iteration_bounds = array<i64: 1>, scalar_prefetch = 0 : i64, scratch_operands = 0 : i64, tpu.core_type = #tpu.core_type<tc>, window_params = [{transform_indices = @transform_0, window_bounds = array<i64: 2, 8>}, {pipeline_mode = #tpu.pipeline_mode<synchronous>, transform_indices = @transform_1, window_bounds = array<i64: 8, 32>}, {pipeline_mode = #tpu.pipeline_mode<synchronous>, transform_indices = @transform_2, window_bounds = array<i64: 128, 32>}, {pipeline_mode = #tpu.pipeline_mode<synchronous>, transform_indices = @transform_3, window_bounds = array<i64: 32, 128>}, {pipeline_mode = #tpu.pipeline_mode<synchronous>, transform_indices = @transform_4, window_bounds = array<i64: 4, 8, 32>}, {pipeline_mode = #tpu.pipeline_mode<synchronous>, transform_indices = @transform_5, window_bounds = array<i64: 1, 32>}, {pipeline_mode = #tpu.pipeline_mode<synchronous>, transform_indices = @transform_6, window_bounds = array<i64: 32, 128>}, {pipeline_mode = #tpu.pipeline_mode<synchronous>, transform_indices = @transform_7, window_bounds = array<i64: 1, 128>}, {transform_indices = @transform_8, window_bounds = array<i64: 2, 8, 128>}]} {
    %c0 = arith.constant 0 : index
    %c0_0 = arith.constant 0 : index
    %0 = vector.load %arg1[%c0, %c0_0] : memref<2x8xi32, #tpu.memory_space<vmem>>, vector<2x8xi32>
    %1 = tpu.iota {dimensions = array<i32: 2>} : vector<2x8x128xi32>
    %2 = vector.shape_cast %0 : vector<2x8xi32> to vector<2x8x1xi32>
    %3 = vector.broadcast %2 : vector<2x8x1xi32> to vector<2x8x128xi32>
    %4 = arith.cmpi eq, %1, %3 : vector<2x8x128xi32>
    %cst = arith.constant 1.000000e+00 : f32
    %cst_1 = arith.constant 0.000000e+00 : f32
    %5 = vector.broadcast %cst : f32 to vector<2x8x128xf32>
    %6 = vector.broadcast %cst_1 : f32 to vector<2x8x128xf32>
    %7 = arith.select %4, %5, %6 : vector<2x8x128xi1>, vector<2x8x128xf32>
    %8 = arith.truncf %7 : vector<2x8x128xf32> to vector<2x8x128xbf16>
    %9 = vector.shape_cast %8 : vector<2x8x128xbf16> to vector<16x128xbf16>
    %c0_2 = arith.constant 0 : index
    %c0_3 = arith.constant 0 : index
    %10 = vector.load %arg3[%c0_2, %c0_3] : memref<128x32xbf16, #tpu.memory_space<vmem>>, vector<128x32xbf16>
    %cst_4 = arith.constant dense<0.000000e+00> : vector<16x32xf32>
    %11 = tpu.matmul %9, %10, %cst_4 {dimension_numbers = #tpu.dot_dimension_numbers<[1], [0], [0], [1], [0, 0, 1, 1], [], []>} : vector<16x128xbf16>, vector<128x32xbf16>, vector<16x32xf32> -> vector<16x32xf32>
    %12 = vector.shape_cast %11 : vector<16x32xf32> to vector<2x8x32xf32>
    %c0_5 = arith.constant 0 : index
    %c0_6 = arith.constant 0 : index
    %13 = vector.load %arg2[%c0_5, %c0_6] : memref<8x32xf32, #tpu.memory_space<vmem>>, vector<8x32xf32>
    %14 = vector.shape_cast %13 : vector<8x32xf32> to vector<1x8x32xf32>
    %15 = vector.broadcast %14 : vector<1x8x32xf32> to vector<2x8x32xf32>
    %16 = arith.addf %12, %15 : vector<2x8x32xf32>
    %17 = vector.shape_cast %16 : vector<2x8x32xf32> to vector<16x32xf32>
    %18 = arith.truncf %17 : vector<16x32xf32> to vector<16x32xbf16>
    %c0_7 = arith.constant 0 : index
    %c0_8 = arith.constant 0 : index
    %19 = vector.load %arg4[%c0_7, %c0_8] : memref<32x128xbf16, #tpu.memory_space<vmem>>, vector<32x128xbf16>
    %cst_9 = arith.constant dense<0.000000e+00> : vector<16x128xf32>
    %20 = tpu.matmul %18, %19, %cst_9 {dimension_numbers = #tpu.dot_dimension_numbers<[1], [0], [0], [1], [0, 0, 1, 1], [], []>} : vector<16x32xbf16>, vector<32x128xbf16>, vector<16x128xf32> -> vector<16x128xf32>
    %21 = arith.truncf %20 : vector<16x128xf32> to vector<16x128xbf16>
    %22 = tpu.iota {dimensions = array<i32: 0>} : vector<8x8xi32>
    %23 = tpu.iota {dimensions = array<i32: 1>} : vector<8x8xi32>
    %24 = arith.cmpi sle, %23, %22 : vector<8x8xi32>
    %cst_10 = arith.constant 0.000000e+00 : f32
    %cst_11 = arith.constant -1.000000e+30 : f32
    %25 = vector.broadcast %cst_10 : f32 to vector<8x8xf32>
    %26 = vector.broadcast %cst_11 : f32 to vector<8x8xf32>
    %27 = arith.select %24, %25, %26 : vector<8x8xi1>, vector<8x8xf32>
    %28 = vector.shape_cast %27 : vector<8x8xf32> to vector<1x8x8xf32>
    %cst_12 = arith.constant 0.000000e+00 : f32
    %29 = vector.broadcast %cst_12 : f32 to vector<16x32xf32>
    %30 = vector.extract_strided_slice %21 {offsets = [0, 0], sizes = [16, 8], strides = [1, 1]} : vector<16x128xbf16> to vector<16x8xbf16>
    %31 = vector.shape_cast %30 : vector<16x8xbf16> to vector<2x8x8xbf16>
    %32 = vector.extract_strided_slice %21 {offsets = [0, 32], sizes = [16, 8], strides = [1, 1]} : vector<16x128xbf16> to vector<16x8xbf16>
    %33 = vector.shape_cast %32 : vector<16x8xbf16> to vector<2x8x8xbf16>
    %34 = vector.extract_strided_slice %21 {offsets = [0, 64], sizes = [16, 8], strides = [1, 1]} : vector<16x128xbf16> to vector<16x8xbf16>
    %35 = vector.shape_cast %34 : vector<16x8xbf16> to vector<2x8x8xbf16>
    "tpu.trace_start"() <{level = 10 : i32, message = "bqd,bkd->bqk"}> : () -> ()
    %cst_13 = arith.constant dense<0.000000e+00> : vector<2x8x8xf32>
    %36 = tpu.matmul %31, %33, %cst_13 {dimension_numbers = #tpu.dot_dimension_numbers<[2], [2], [1], [1], [0, 0, 0, 1, 1, 1], [0], [0]>} : vector<2x8x8xbf16>, vector<2x8x8xbf16>, vector<2x8x8xf32> -> vector<2x8x8xf32>
    "tpu.trace_stop"() : () -> ()
    %37 = vector.broadcast %28 : vector<1x8x8xf32> to vector<2x8x8xf32>
    %38 = arith.addf %36, %37 : vector<2x8x8xf32>
    %cst_14 = arith.constant dense<0xFF800000> : vector<2x8xf32>
    %39 = vector.multi_reduction <maximumf>, %38, %cst_14 [2] : vector<2x8x8xf32> to vector<2x8xf32>
    %40 = vector.shape_cast %39 : vector<2x8xf32> to vector<2x8x1xf32>
    %41 = vector.broadcast %40 : vector<2x8x1xf32> to vector<2x8x8xf32>
    %42 = arith.subf %38, %41 : vector<2x8x8xf32>
    %43 = math.exp %42 : vector<2x8x8xf32>
    %cst_15 = arith.constant dense<0.000000e+00> : vector<2x8xf32>
    %44 = vector.multi_reduction <add>, %43, %cst_15 [2] : vector<2x8x8xf32> to vector<2x8xf32>
    %45 = vector.shape_cast %44 : vector<2x8xf32> to vector<2x8x1xf32>
    %46 = tpu.reciprocal %45 {approx = true} : vector<2x8x1xf32> -> vector<2x8x1xf32>
    %47 = vector.broadcast %46 : vector<2x8x1xf32> to vector<2x8x8xf32>
    %48 = arith.mulf %43, %47 : vector<2x8x8xf32>
    %49 = arith.truncf %48 : vector<2x8x8xf32> to vector<2x8x8xbf16>
    "tpu.trace_start"() <{level = 10 : i32, message = "bqk,bkd->bqd"}> : () -> ()
    %cst_16 = arith.constant dense<0.000000e+00> : vector<2x8x8xf32>
    %50 = tpu.matmul %49, %35, %cst_16 {dimension_numbers = #tpu.dot_dimension_numbers<[2], [1], [1], [2], [0, 0, 0, 1, 1, 2], [0], [0]>} : vector<2x8x8xbf16>, vector<2x8x8xbf16>, vector<2x8x8xf32> -> vector<2x8x8xf32>
    "tpu.trace_stop"() : () -> ()
    %51 = vector.shape_cast %50 : vector<2x8x8xf32> to vector<16x8xf32>
    %52 = arith.truncf %51 : vector<16x8xf32> to vector<16x8xbf16>
    %c0_17 = arith.constant 0 : index
    %c0_18 = arith.constant 0 : index
    %c0_19 = arith.constant 0 : index
    %53 = vector.load %arg5[%c0_17, %c0_18, %c0_19] : memref<4x8x32xbf16, #tpu.memory_space<vmem>>, vector<1x8x32xbf16>
    %54 = vector.shape_cast %53 : vector<1x8x32xbf16> to vector<8x32xbf16>
    %cst_20 = arith.constant dense<0.000000e+00> : vector<16x32xf32>
    %55 = tpu.matmul %52, %54, %cst_20 {dimension_numbers = #tpu.dot_dimension_numbers<[1], [0], [0], [1], [0, 0, 1, 1], [], []>} : vector<16x8xbf16>, vector<8x32xbf16>, vector<16x32xf32> -> vector<16x32xf32>
    %56 = arith.addf %29, %55 : vector<16x32xf32>
    %57 = vector.extract_strided_slice %21 {offsets = [0, 8], sizes = [16, 8], strides = [1, 1]} : vector<16x128xbf16> to vector<16x8xbf16>
    %58 = vector.shape_cast %57 : vector<16x8xbf16> to vector<2x8x8xbf16>
    %59 = vector.extract_strided_slice %21 {offsets = [0, 40], sizes = [16, 8], strides = [1, 1]} : vector<16x128xbf16> to vector<16x8xbf16>
    %60 = vector.shape_cast %59 : vector<16x8xbf16> to vector<2x8x8xbf16>
    %61 = vector.extract_strided_slice %21 {offsets = [0, 72], sizes = [16, 8], strides = [1, 1]} : vector<16x128xbf16> to vector<16x8xbf16>
    %62 = vector.shape_cast %61 : vector<16x8xbf16> to vector<2x8x8xbf16>
    "tpu.trace_start"() <{level = 10 : i32, message = "bqd,bkd->bqk"}> : () -> ()
    %cst_21 = arith.constant dense<0.000000e+00> : vector<2x8x8xf32>
    %63 = tpu.matmul %58, %60, %cst_21 {dimension_numbers = #tpu.dot_dimension_numbers<[2], [2], [1], [1], [0, 0, 0, 1, 1, 1], [0], [0]>} : vector<2x8x8xbf16>, vector<2x8x8xbf16>, vector<2x8x8xf32> -> vector<2x8x8xf32>
    "tpu.trace_stop"() : () -> ()
    %64 = vector.broadcast %28 : vector<1x8x8xf32> to vector<2x8x8xf32>
    %65 = arith.addf %63, %64 : vector<2x8x8xf32>
    %cst_22 = arith.constant dense<0xFF800000> : vector<2x8xf32>
    %66 = vector.multi_reduction <maximumf>, %65, %cst_22 [2] : vector<2x8x8xf32> to vector<2x8xf32>
    %67 = vector.shape_cast %66 : vector<2x8xf32> to vector<2x8x1xf32>
    %68 = vector.broadcast %67 : vector<2x8x1xf32> to vector<2x8x8xf32>
    %69 = arith.subf %65, %68 : vector<2x8x8xf32>
    %70 = math.exp %69 : vector<2x8x8xf32>
    %cst_23 = arith.constant dense<0.000000e+00> : vector<2x8xf32>
    %71 = vector.multi_reduction <add>, %70, %cst_23 [2] : vector<2x8x8xf32> to vector<2x8xf32>
    %72 = vector.shape_cast %71 : vector<2x8xf32> to vector<2x8x1xf32>
    %73 = tpu.reciprocal %72 {approx = true} : vector<2x8x1xf32> -> vector<2x8x1xf32>
    %74 = vector.broadcast %73 : vector<2x8x1xf32> to vector<2x8x8xf32>
    %75 = arith.mulf %70, %74 : vector<2x8x8xf32>
    %76 = arith.truncf %75 : vector<2x8x8xf32> to vector<2x8x8xbf16>
    "tpu.trace_start"() <{level = 10 : i32, message = "bqk,bkd->bqd"}> : () -> ()
    %cst_24 = arith.constant dense<0.000000e+00> : vector<2x8x8xf32>
    %77 = tpu.matmul %76, %62, %cst_24 {dimension_numbers = #tpu.dot_dimension_numbers<[2], [1], [1], [2], [0, 0, 0, 1, 1, 2], [0], [0]>} : vector<2x8x8xbf16>, vector<2x8x8xbf16>, vector<2x8x8xf32> -> vector<2x8x8xf32>
    "tpu.trace_stop"() : () -> ()
    %78 = vector.shape_cast %77 : vector<2x8x8xf32> to vector<16x8xf32>
    %79 = arith.truncf %78 : vector<16x8xf32> to vector<16x8xbf16>
    %c1 = arith.constant 1 : index
    %c0_25 = arith.constant 0 : index
    %c0_26 = arith.constant 0 : index
    %80 = vector.load %arg5[%c1, %c0_25, %c0_26] : memref<4x8x32xbf16, #tpu.memory_space<vmem>>, vector<1x8x32xbf16>
    %81 = vector.shape_cast %80 : vector<1x8x32xbf16> to vector<8x32xbf16>
    %cst_27 = arith.constant dense<0.000000e+00> : vector<16x32xf32>
    %82 = tpu.matmul %79, %81, %cst_27 {dimension_numbers = #tpu.dot_dimension_numbers<[1], [0], [0], [1], [0, 0, 1, 1], [], []>} : vector<16x8xbf16>, vector<8x32xbf16>, vector<16x32xf32> -> vector<16x32xf32>
    %83 = arith.addf %56, %82 : vector<16x32xf32>
    %84 = vector.extract_strided_slice %21 {offsets = [0, 16], sizes = [16, 8], strides = [1, 1]} : vector<16x128xbf16> to vector<16x8xbf16>
    %85 = vector.shape_cast %84 : vector<16x8xbf16> to vector<2x8x8xbf16>
    %86 = vector.extract_strided_slice %21 {offsets = [0, 48], sizes = [16, 8], strides = [1, 1]} : vector<16x128xbf16> to vector<16x8xbf16>
    %87 = vector.shape_cast %86 : vector<16x8xbf16> to vector<2x8x8xbf16>
    %88 = vector.extract_strided_slice %21 {offsets = [0, 80], sizes = [16, 8], strides = [1, 1]} : vector<16x128xbf16> to vector<16x8xbf16>
    %89 = vector.shape_cast %88 : vector<16x8xbf16> to vector<2x8x8xbf16>
    "tpu.trace_start"() <{level = 10 : i32, message = "bqd,bkd->bqk"}> : () -> ()
    %cst_28 = arith.constant dense<0.000000e+00> : vector<2x8x8xf32>
    %90 = tpu.matmul %85, %87, %cst_28 {dimension_numbers = #tpu.dot_dimension_numbers<[2], [2], [1], [1], [0, 0, 0, 1, 1, 1], [0], [0]>} : vector<2x8x8xbf16>, vector<2x8x8xbf16>, vector<2x8x8xf32> -> vector<2x8x8xf32>
    "tpu.trace_stop"() : () -> ()
    %91 = vector.broadcast %28 : vector<1x8x8xf32> to vector<2x8x8xf32>
    %92 = arith.addf %90, %91 : vector<2x8x8xf32>
    %cst_29 = arith.constant dense<0xFF800000> : vector<2x8xf32>
    %93 = vector.multi_reduction <maximumf>, %92, %cst_29 [2] : vector<2x8x8xf32> to vector<2x8xf32>
    %94 = vector.shape_cast %93 : vector<2x8xf32> to vector<2x8x1xf32>
    %95 = vector.broadcast %94 : vector<2x8x1xf32> to vector<2x8x8xf32>
    %96 = arith.subf %92, %95 : vector<2x8x8xf32>
    %97 = math.exp %96 : vector<2x8x8xf32>
    %cst_30 = arith.constant dense<0.000000e+00> : vector<2x8xf32>
    %98 = vector.multi_reduction <add>, %97, %cst_30 [2] : vector<2x8x8xf32> to vector<2x8xf32>
    %99 = vector.shape_cast %98 : vector<2x8xf32> to vector<2x8x1xf32>
    %100 = tpu.reciprocal %99 {approx = true} : vector<2x8x1xf32> -> vector<2x8x1xf32>
    %101 = vector.broadcast %100 : vector<2x8x1xf32> to vector<2x8x8xf32>
    %102 = arith.mulf %97, %101 : vector<2x8x8xf32>
    %103 = arith.truncf %102 : vector<2x8x8xf32> to vector<2x8x8xbf16>
    "tpu.trace_start"() <{level = 10 : i32, message = "bqk,bkd->bqd"}> : () -> ()
    %cst_31 = arith.constant dense<0.000000e+00> : vector<2x8x8xf32>
    %104 = tpu.matmul %103, %89, %cst_31 {dimension_numbers = #tpu.dot_dimension_numbers<[2], [1], [1], [2], [0, 0, 0, 1, 1, 2], [0], [0]>} : vector<2x8x8xbf16>, vector<2x8x8xbf16>, vector<2x8x8xf32> -> vector<2x8x8xf32>
    "tpu.trace_stop"() : () -> ()
    %105 = vector.shape_cast %104 : vector<2x8x8xf32> to vector<16x8xf32>
    %106 = arith.truncf %105 : vector<16x8xf32> to vector<16x8xbf16>
    %c2 = arith.constant 2 : index
    %c0_32 = arith.constant 0 : index
    %c0_33 = arith.constant 0 : index
    %107 = vector.load %arg5[%c2, %c0_32, %c0_33] : memref<4x8x32xbf16, #tpu.memory_space<vmem>>, vector<1x8x32xbf16>
    %108 = vector.shape_cast %107 : vector<1x8x32xbf16> to vector<8x32xbf16>
    %cst_34 = arith.constant dense<0.000000e+00> : vector<16x32xf32>
    %109 = tpu.matmul %106, %108, %cst_34 {dimension_numbers = #tpu.dot_dimension_numbers<[1], [0], [0], [1], [0, 0, 1, 1], [], []>} : vector<16x8xbf16>, vector<8x32xbf16>, vector<16x32xf32> -> vector<16x32xf32>
    %110 = arith.addf %83, %109 : vector<16x32xf32>
    %111 = vector.extract_strided_slice %21 {offsets = [0, 24], sizes = [16, 8], strides = [1, 1]} : vector<16x128xbf16> to vector<16x8xbf16>
    %112 = vector.shape_cast %111 : vector<16x8xbf16> to vector<2x8x8xbf16>
    %113 = vector.extract_strided_slice %21 {offsets = [0, 56], sizes = [16, 8], strides = [1, 1]} : vector<16x128xbf16> to vector<16x8xbf16>
    %114 = vector.shape_cast %113 : vector<16x8xbf16> to vector<2x8x8xbf16>
    %115 = vector.extract_strided_slice %21 {offsets = [0, 88], sizes = [16, 8], strides = [1, 1]} : vector<16x128xbf16> to vector<16x8xbf16>
    %116 = vector.shape_cast %115 : vector<16x8xbf16> to vector<2x8x8xbf16>
    "tpu.trace_start"() <{level = 10 : i32, message = "bqd,bkd->bqk"}> : () -> ()
    %cst_35 = arith.constant dense<0.000000e+00> : vector<2x8x8xf32>
    %117 = tpu.matmul %112, %114, %cst_35 {dimension_numbers = #tpu.dot_dimension_numbers<[2], [2], [1], [1], [0, 0, 0, 1, 1, 1], [0], [0]>} : vector<2x8x8xbf16>, vector<2x8x8xbf16>, vector<2x8x8xf32> -> vector<2x8x8xf32>
    "tpu.trace_stop"() : () -> ()
    %118 = vector.broadcast %28 : vector<1x8x8xf32> to vector<2x8x8xf32>
    %119 = arith.addf %117, %118 : vector<2x8x8xf32>
    %cst_36 = arith.constant dense<0xFF800000> : vector<2x8xf32>
    %120 = vector.multi_reduction <maximumf>, %119, %cst_36 [2] : vector<2x8x8xf32> to vector<2x8xf32>
    %121 = vector.shape_cast %120 : vector<2x8xf32> to vector<2x8x1xf32>
    %122 = vector.broadcast %121 : vector<2x8x1xf32> to vector<2x8x8xf32>
    %123 = arith.subf %119, %122 : vector<2x8x8xf32>
    %124 = math.exp %123 : vector<2x8x8xf32>
    %cst_37 = arith.constant dense<0.000000e+00> : vector<2x8xf32>
    %125 = vector.multi_reduction <add>, %124, %cst_37 [2] : vector<2x8x8xf32> to vector<2x8xf32>
    %126 = vector.shape_cast %125 : vector<2x8xf32> to vector<2x8x1xf32>
    %127 = tpu.reciprocal %126 {approx = true} : vector<2x8x1xf32> -> vector<2x8x1xf32>
    %128 = vector.broadcast %127 : vector<2x8x1xf32> to vector<2x8x8xf32>
    %129 = arith.mulf %124, %128 : vector<2x8x8xf32>
    %130 = arith.truncf %129 : vector<2x8x8xf32> to vector<2x8x8xbf16>
    "tpu.trace_start"() <{level = 10 : i32, message = "bqk,bkd->bqd"}> : () -> ()
    %cst_38 = arith.constant dense<0.000000e+00> : vector<2x8x8xf32>
    %131 = tpu.matmul %130, %116, %cst_38 {dimension_numbers = #tpu.dot_dimension_numbers<[2], [1], [1], [2], [0, 0, 0, 1, 1, 2], [0], [0]>} : vector<2x8x8xbf16>, vector<2x8x8xbf16>, vector<2x8x8xf32> -> vector<2x8x8xf32>
    "tpu.trace_stop"() : () -> ()
    %132 = vector.shape_cast %131 : vector<2x8x8xf32> to vector<16x8xf32>
    %133 = arith.truncf %132 : vector<16x8xf32> to vector<16x8xbf16>
    %c3 = arith.constant 3 : index
    %c0_39 = arith.constant 0 : index
    %c0_40 = arith.constant 0 : index
    %134 = vector.load %arg5[%c3, %c0_39, %c0_40] : memref<4x8x32xbf16, #tpu.memory_space<vmem>>, vector<1x8x32xbf16>
    %135 = vector.shape_cast %134 : vector<1x8x32xbf16> to vector<8x32xbf16>
    %cst_41 = arith.constant dense<0.000000e+00> : vector<16x32xf32>
    %136 = tpu.matmul %133, %135, %cst_41 {dimension_numbers = #tpu.dot_dimension_numbers<[1], [0], [0], [1], [0, 0, 1, 1], [], []>} : vector<16x8xbf16>, vector<8x32xbf16>, vector<16x32xf32> -> vector<16x32xf32>
    %137 = arith.addf %110, %136 : vector<16x32xf32>
    %c0_42 = arith.constant 0 : index
    %c0_43 = arith.constant 0 : index
    %138 = vector.load %arg6[%c0_42, %c0_43] : memref<1x32xf32, #tpu.memory_space<vmem>>, vector<1x32xf32>
    %139 = vector.broadcast %138 : vector<1x32xf32> to vector<16x32xf32>
    %140 = arith.addf %137, %139 : vector<16x32xf32>
    %cst_44 = arith.constant 0.000000e+00 : f32
    %141 = vector.broadcast %cst_44 : f32 to vector<16x32xf32>
    %142 = arith.maximumf %140, %141 : vector<16x32xf32>
    %143 = arith.truncf %142 : vector<16x32xf32> to vector<16x32xbf16>
    %c0_45 = arith.constant 0 : index
    %c0_46 = arith.constant 0 : index
    %144 = vector.load %arg7[%c0_45, %c0_46] : memref<32x128xbf16, #tpu.memory_space<vmem>>, vector<32x128xbf16>
    %cst_47 = arith.constant dense<0.000000e+00> : vector<16x128xf32>
    %145 = tpu.matmul %143, %144, %cst_47 {dimension_numbers = #tpu.dot_dimension_numbers<[1], [0], [0], [1], [0, 0, 1, 1], [], []>} : vector<16x32xbf16>, vector<32x128xbf16>, vector<16x128xf32> -> vector<16x128xf32>
    %c0_48 = arith.constant 0 : index
    %c0_49 = arith.constant 0 : index
    %146 = vector.load %arg8[%c0_48, %c0_49] : memref<1x128xf32, #tpu.memory_space<vmem>>, vector<1x128xf32>
    %147 = vector.broadcast %146 : vector<1x128xf32> to vector<16x128xf32>
    %148 = arith.addf %145, %147 : vector<16x128xf32>
    %149 = vector.shape_cast %148 : vector<16x128xf32> to vector<2x8x128xf32>
    %150 = arith.truncf %149 : vector<2x8x128xf32> to vector<2x8x128xbf16>
    %c0_50 = arith.constant 0 : index
    %c0_51 = arith.constant 0 : index
    %c0_52 = arith.constant 0 : index
    %151 = vector.load %arg9[%c0_50, %c0_51, %c0_52] : memref<2x8x128xbf16, #tpu.memory_space<vmem>>, vector<2x8x128xbf16>
    tpu.vector_store %arg9[%c0_50, %c0_51, %c0_52], %150 {strides = array<i32>} : memref<2x8x128xbf16, #tpu.memory_space<vmem>>, vector<2x8x128xbf16>,
    return
  }
  func.func @transform_0(%arg0: i32) -> (i32, i32) {
    %c0_i32 = arith.constant 0 : i32
    %c0_i32_0 = arith.constant 0 : i32
    return %arg0, %c0_i32 : i32, i32
  }
  func.func @transform_1(%arg0: i32) -> (i32, i32) {
    %c0_i32 = arith.constant 0 : i32
    %c0_i32_0 = arith.constant 0 : i32
    %c0_i32_1 = arith.constant 0 : i32
    return %c0_i32, %c0_i32_0 : i32, i32
  }
  func.func @transform_2(%arg0: i32) -> (i32, i32) {
    %c0_i32 = arith.constant 0 : i32
    %c0_i32_0 = arith.constant 0 : i32
    %c0_i32_1 = arith.constant 0 : i32
    return %c0_i32, %c0_i32_0 : i32, i32
  }
  func.func @transform_3(%arg0: i32) -> (i32, i32) {
    %c0_i32 = arith.constant 0 : i32
    %c0_i32_0 = arith.constant 0 : i32
    %c0_i32_1 = arith.constant 0 : i32
    return %c0_i32, %c0_i32_0 : i32, i32
  }
  func.func @transform_4(%arg0: i32) -> (i32, i32, i32) {
    %c0_i32 = arith.constant 0 : i32
    %c0_i32_0 = arith.constant 0 : i32
    %c0_i32_1 = arith.constant 0 : i32
    %c0_i32_2 = arith.constant 0 : i32
    return %c0_i32, %c0_i32_0, %c0_i32_1 : i32, i32, i32
  }
  func.func @transform_5(%arg0: i32) -> (i32, i32) {
    %c0_i32 = arith.constant 0 : i32
    %c0_i32_0 = arith.constant 0 : i32
    %c0_i32_1 = arith.constant 0 : i32
    return %c0_i32, %c0_i32_0 : i32, i32
  }
  func.func @transform_6(%arg0: i32) -> (i32, i32) {
    %c0_i32 = arith.constant 0 : i32
    %c0_i32_0 = arith.constant 0 : i32
    %c0_i32_1 = arith.constant 0 : i32
    return %c0_i32, %c0_i32_0 : i32, i32
  }
  func.func @transform_7(%arg0: i32) -> (i32, i32) {
    %c0_i32 = arith.constant 0 : i32
    %c0_i32_0 = arith.constant 0 : i32
    %c0_i32_1 = arith.constant 0 : i32
    return %c0_i32, %c0_i32_0 : i32, i32
  }
  func.func @transform_8(%arg0: i32) -> (i32, i32, i32) {
    %c0_i32 = arith.constant 0 : i32
    %c0_i32_0 = arith.constant 0 : i32
    %c0_i32_1 = arith.constant 0 : i32
    return %arg0, %c0_i32, %c0_i32_0 : i32, i32, i32
  }
}

</mosaic_0001>

<bundles_post_ra>
// kernel: tpu_custom_call.1
= control target key start
LH: loop header
LB: loop body
LE: loop exit
PB: predicated region body
PF: predicated region fallthrough
CT: control target
= control target key end

     0   :  { %v32_v0 = vlaneseq  ;;  %v1766_v2 = vmov 0.0   ;;  %vm1767_vm0 = vmmov 0   ;;  %s2105_s0 = inlined_call_operand.vmem [shape: s32[2,8], index: 0, kind: input, shape index: {}]   ;;  %s2106_s1 = inlined_call_operand.vmem [shape: f32[8,32], index: 1, kind: input, shape index: {}]   ;;  %s2107_s2 = inlined_call_operand.vmem [shape: bf16[128,32], index: 2, kind: input, shape index: {}]   ;;  %s2108_s3 = inlined_call_operand.vmem [shape: bf16[32,128], index: 3, kind: input, shape index: {}]   ;;  %s2109_s4 = inlined_call_operand.vmem [shape: bf16[4,8,32], index: 4, kind: input, shape index: {}]   ;;  %s2110_s5 = inlined_call_operand.vmem [shape: f32[1,32], index: 5, kind: input, shape index: {}]   ;;  %s2111_s6 = inlined_call_operand.vmem [shape: bf16[32,128], index: 6, kind: input, shape index: {}]   ;;  %s2112_s7 = inlined_call_operand.vmem [shape: f32[1,128], index: 7, kind: input, shape index: {}]   ;;  %s2113_s8 = inlined_call_operand.hbm [shape: bf16[2,8,128], index: 8, kind: output, shape index: {}]  }
   0x1   :  { %v1700_v1 = vld [vmem:[%s2107_s2 + $0x38] sm:$0xff]   ;;  %1527 = vmatprep.subr.bf16.mxu0 %v1766_v2  ;;  %1547 = vmatprep.subr.bf16.mxu1 %v1766_v2  ;;  %v1701_v4 = vld [vmem:[%s2107_s2 + $0x30] sm:$0xff]   ;;  %v31_v5 = vld [vmem:[%s2105_s0] sm:$0x3] }
   0x2   :  { %v1833_v3 = vshrl.u32 %v32_v0, 7  ;;  %1528 = vmatpush3.bf16.msra.mxu0 %v1700_v1  ;;  %v1702_v9 = vld [vmem:[%s2107_s2 + $0x28] sm:$0xff]   ;;  %1543 = vmatprep.mubr.msk.bf16.mxu0 %vm1767_vm0, %v1766_v2  ;;  %v1703_v11 = vld [vmem:[%s2107_s2 + $0x20] sm:$0xff]  }
   0x3   :  { %1529 = vmatprep.subr.bf16.mxu0 %v1766_v2  ;;  %1551 = vmatprep.mubr.msk.bf16.mxu1 %vm1767_vm0, %v1766_v2 }
   0x4   :  { %v36_v6 = vsub.s32 0, %v1833_v3  ;;  %v43_v7 = vsub.s32 1, %v1833_v3 }
   0x6   :  { %v37_v8 = vrot.slane %v31_v5, %v36_v6  ;;  %1530 = vmatpush3.bf16.msra.mxu0 %v1701_v4  ;;  %v44_v10 = vrot.slane %v31_v5, %v43_v7 }
   0x7   :  { %1531 = vmatprep.subr.bf16.mxu0 %v1766_v2 }
   0x8   :  { %39 = vbcast.lane.b32.xlu0 %v37_v8, 256 }
   0xa   :  { %1532 = vmatpush3.bf16.msra.mxu0 %v1702_v9 }
   0xb   :  { %1533 = vmatprep.subr.bf16.mxu0 %v1766_v2 }
   0xc   :  { %13 = vsyncpa [#allocation3], 0  ;;  %46 = vbcast.lane.b32.xlu0 %v44_v10, 256  ;;  %v1704_v12 = vld [vmem:[%s2107_s2 + $0x18] sm:$0xff]   ;;  %v1705_v13 = vld [vmem:[%s2107_s2 + $0x10] sm:$0xff]   ;;  %v33_v17 = vand.u32 127, %v32_v0 }
   0xd   :  { %v1706_v14 = vld [vmem:[%s2107_s2 + $0x8] sm:$0xff]   ;;  %v1707_v15 = vld [vmem:[%s2107_s2] sm:$0xff]   ;;  %v1768_v19 = vmov 1.0|1.0   ;;  %vm185_vm4 = vcmask 261120   ;;  %vm242_vm5 = vcmask 64512  }
   0xe   :  { %1534 = vmatpush3.bf16.msra.mxu0 %v1703_v11  ;;  %v1708_v20 = vld [vmem:[%s2108_s3 + $0x8] sm:$0xff]   ;;  %v1709_v21 = vld [vmem:[%s2108_s3] sm:$0xff]   ;;  %s1769_s3 = smov 96   ;;  %vm233_vm6 = vcmp.le.s32.totalorder %v33_v17, %v1833_v3  ;;  %v1770_v40 = vmov -1e+30   ;;  %s1772_s27 = smov 88  }
   0xf   :  { %1535 = vmatprep.subr.bf16.mxu0 %v1766_v2  ;;  %1548 = vmatpush3.bf16.msra.mxu1 %v1708_v20  ;;  %v165_v23 = vld [vmem:[%s2106_s1] sm:$0xff]  ;;  %v1908_v41 = vsel %vm233_vm6, 0.0, %v1770_v40  ;;  %s1771_s1 = smov 64   ;;  %s1773_s28 = smov 120   ;;  %vm366_vm7 = vcmask 1043456  }
  0x10   :  { %1549 = vmatprep.subr.bf16.mxu1 %v1766_v2  ;;  %s1774_s29 = smov 56   ;;  %s1775_s30 = smov 80  }
  0x11   :  { %s1776_s9 = smov 112   ;;  %s1777_s13 = smov 48  }
  0x12   :  { %1536 = vmatpush3.bf16.msra.mxu0 %v1704_v12  ;;  %s1778_s14 = smov 72   ;;  %s1779_s15 = smov 104  }
  0x13   :  { %1537 = vmatprep.subr.bf16.mxu0 %v1766_v2  ;;  %1550 = vmatpush3.bf16.msra.mxu1 %v1709_v21  ;;  %s1780_s18 = smov 40  }
  0x14   :  { %1555 = vmatprep.subr.bf16.mxu1 %v1766_v2 }
  0x16   :  { %1538 = vmatpush3.bf16.msra.mxu0 %v1705_v13 }
  0x17   :  { %1539 = vmatprep.subr.bf16.mxu0 %v1766_v2 }
  0x1a   :  { %1540 = vmatpush3.bf16.msra.mxu0 %v1706_v14 }
  0x1b   :  { %1541 = vmatprep.subr.bf16.mxu0 %v1766_v2 }
  0x1e   :  { %1542 = vmatpush3.bf16.msra.mxu0 %v1707_v15 }
  0x1f   :  { %1573 = vmatprep.subr.bf16.mxu0 %v1766_v2 }
  0x7a   :  { %v40_v16 = vpop.permute.xlu0 %39 }
  0x7b   :  { %vm48_vm1 = vcmp.eq.s32.totalorder %v33_v17, %v40_v16 }
  0x7e   :  { %v47_v18 = vpop.permute.xlu0 %46 }
  0x7f   :  { %vm49_vm2 = vcmp.eq.s32.totalorder %v33_v17, %v47_v18 }
  0x80   :  { %vm1463_vm3 = vmpackc.low %vm49_vm2, %vm48_vm1 }
  0x81   :  { %1544 = vmatmul.mubr.msk.bf16.vlgmr.msra.gmra.mxu0 %vm1463_vm3, %v1768_v19 }
  0x82   :  { %1575 = vmatprep.mubr.msk.bf16.mxu0 %vm1767_vm0, %v1766_v2 }
 0x141   :  { %v158_v22 = vpop.f32.mrf.mxu0 }
 0x142   :  { %v166_v26 = vadd.f32 %v165_v23, %v158_v22 }
 0x143   :  { %v1545_v24 = vpop.f32.mrf.mxu0 }
 0x145   :  { %v161_v25 = vpop.f32.mrf.mxu0 }
 0x146   :  { %v167_v27 = vadd.f32 %v165_v23, %v161_v25 }
 0x147   :  { %v1546_v28 = vpop.f32.mrf.mxu0 }
 0x148   :  { %v168_v29 = vpack.c.bf16 %v167_v27, %v166_v26 }
 0x14a   :  { %1552 = vmatmul.mubr.msk.bf16.vlgmr.msra.gmra.mxu1 %vm185_vm4, %v168_v29 }
 0x14b   :  { %1557 = vmatprep.mubr.msk.bf16.mxu1 %vm1767_vm0, %v1766_v2 }
 0x20a   :  { %v223_v30 = vpop.f32.mrf.mxu1 }
 0x20b   :  { %v1889_v31 = vpack.c.bf16 %v223_v30, %v223_v30 }
 0x20c   :  { %v1553_v32 = vpop.f32.mrf.mxu1 }
 0x20d   :  { %240 = vrot.lane.b32.xlu1 %v1889_v31, %s1769_s3 }
 0x20e   :  { %v226_v33 = vpop.f32.mrf.mxu1 }
 0x20f   :  { %v1892_v34 = vpack.c.bf16 %v226_v33, %v226_v33 }
 0x210   :  { %v1554_v35 = vpop.f32.mrf.mxu1 }
 0x211   :  { %289 = vrot.lane.b32.xlu1 %v1892_v34, %s1769_s3 }
 0x27f   :  { %v241_v36 = vpop.permute.xlu1 %240 }
 0x280   :  { %v247_v37 = vsel %vm242_vm5, %v241_v36, 0 }
 0x281   :  { %1556 = vmatpush3.bf16.xpose.msra.mxu1 %v247_v37 }
 0x282   :  { %1561 = vmatprep.subr.bf16.mxu1 %v1766_v2 }
 0x283   :  { %v290_v38 = vpop.permute.xlu1 %289 }
 0x284   :  { %v295_v39 = vsel %vm242_vm5, %v290_v38, 0 }
 0x288   :  { %1558 = vmatmul.mubr.msk.bf16.vlgmr.msra.gmra.mxu1 %vm242_vm5, %v1889_v31 }
 0x289   :  { %1562 = vmatpush3.bf16.xpose.msra.mxu1 %v295_v39  ;;  %1563 = vmatprep.mubr.msk.bf16.mxu1 %vm1767_vm0, %v1766_v2 }
 0x28a   :  { %1567 = vmatprep.subr.bf16.mxu1 %v1766_v2 }
 0x290   :  { %1564 = vmatmul.mubr.msk.bf16.vlgmr.msra.gmra.mxu1 %vm242_vm5, %v1892_v34 }
 0x291   :  { %1569 = vmatprep.mubr.msk.bf16.mxu1 %vm1767_vm0, %v1766_v2 }
 0x348   :  { %v283_v42 = vpop.f32.mrf.mxu1 }
 0x349   :  { %v284_v43 = vadd.f32 %v283_v42, %v1908_v41 }
 0x34a   :  { %v1559_v44 = vpop.f32.mrf.mxu1 }
 0x34b   :  { %v337_v45 = vsel %vm242_vm5, %v284_v43, -inf }
 0x34c   :  { %338 = vmax.xlane.f32.xlu0 %v337_v45  ;;  %v286_v46 = vpop.f32.mrf.mxu1 }
 0x34e   :  { %v1560_v47 = vpop.f32.mrf.mxu1 }
 0x350   :  { %v331_v48 = vpop.f32.mrf.mxu1 }
 0x351   :  { %v332_v49 = vadd.f32 %v331_v48, %v1908_v41 }
 0x352   :  { %v1565_v50 = vpop.f32.mrf.mxu1 }
 0x353   :  { %v340_v51 = vsel %vm242_vm5, %v332_v49, -inf }
 0x354   :  { %341 = vmax.xlane.f32.xlu1 %v340_v51  ;;  %v334_v52 = vpop.f32.mrf.mxu1 }
 0x356   :  { %v1566_v53 = vpop.f32.mrf.mxu1 }
 0x365   :  { %361 = vrot.lane.b32.xlu1 %v1889_v31, %s1771_s1 }
 0x369   :  { %462 = vrot.lane.b32.xlu1 %v1889_v31, %s1772_s27 }
 0x36d   :  { %512 = vrot.lane.b32.xlu1 %v1892_v34, %s1772_s27 }
 0x371   :  { %510 = vrot.lane.b32.xlu1 %v1892_v34, %s1773_s28 }
 0x3d5   :  { %v339_v54 = vpop.xlane.xlu0 %338 }
 0x3d6   :  { %v343_v55 = vsub.f32 %v284_v43, %v339_v54 }
 0x3d8   :  { %v345_v56 = vmul.f32 1.442695, %v343_v55 }
 0x3da   :  { %1712 = vpow2.f32 %v345_v56 }
 0x3dd   :  { %v342_v57 = vpop.xlane.xlu1 %341 }
 0x3de   :  { %v344_v58 = vsub.f32 %v332_v49, %v342_v57 }
 0x3e0   :  { %v347_v59 = vmul.f32 1.442695, %v344_v58 }
 0x3e1   :  { %v362_v60 = vpop.permute.xlu1 %361 }
 0x3e2   :  { %1714 = vpow2.f32 %v347_v59  ;;  %v368_v61 = vsel %vm366_vm7, %v362_v60, 0 }
 0x3e3   :  { %1568 = vmatpush3.bf16.msra.mxu1 %v368_v61 }
 0x3e4   :  { %1579 = vmatprep.subr.bf16.mxu1 %v1766_v2 }
 0x3e5   :  { %v463_v9 = vpop.permute.xlu1 %462 }
 0x3e6   :  { %v468_v11 = vsel %vm242_vm5, %v463_v9, 0 }
 0x3e7   :  { %v1713_v62 = vpop.eup %1712 }
 0x3e8   :  { %v349_v63 = vsel %vm242_vm5, %v1713_v62, 0.0 }
 0x3e9   :  { %350 = vadd.xlane.f32.xlu0 %v349_v63  ;;  %v513_v14 = vpop.permute.xlu1 %512  ;;  %v459_v63 = vld [vmem:[%s2109_s4] sm:$0xf] }
 0x3ea   :  { %v518_v17 = vsel %vm242_vm5, %v513_v14, 0 }
 0x3ed   :  { %v511_v18 = vpop.permute.xlu1 %510 }
 0x3ef   :  { %v1715_v0 = vpop.eup %1714 }
 0x3f0   :  { %v352_v1 = vsel %vm242_vm5, %v1715_v0, 0.0 }
 0x3f1   :  { %353 = vadd.xlane.f32.xlu0 %v352_v1 }
 0x407   :  { %410 = vrot.lane.b32.xlu0 %v1892_v34, %s1771_s1 }
 0x40b   :  { %460 = vrot.lane.b32.xlu0 %v1889_v31, %s1773_s28 }
 0x472   :  { %v351_v3 = vpop.xlane.xlu0 %350 }
 0x473   :  { %1716 = vrcp.f32 %v351_v3  ;;  %v734_v3 = vsel %vm366_vm7, %v459_v63, 0 }
 0x47a   :  { %v354_v4 = vpop.xlane.xlu0 %353 }
 0x47b   :  { %1718 = vrcp.f32 %v354_v4 }
 0x47e   :  { %v411_v5 = vpop.permute.xlu0 %410 }
 0x47f   :  { %v416_v6 = vsel %vm366_vm7, %v411_v5, 0 }
 0x480   :  { %v1717_v7 = vpop.eup %1716  ;;  %1574 = vmatpush3.bf16.msra.mxu0 %v416_v6 }
 0x481   :  { %v357_v8 = vmul.f32 %v1717_v7, %v1713_v62  ;;  %1585 = vmatprep.subr.bf16.mxu0 %v1766_v2 }
 0x482   :  { %v461_v16 = vpop.permute.xlu0 %460 }
 0x483   :  { %v359_v10 = vpack.c.bf16 %v357_v8, %v357_v8  ;;  %v1442_v8 = vld [vmem:[%s2109_s4 + $0x4] sm:$0xf] }
 0x484   :  { %v687_v9 = vsel %vm366_vm7, %v1442_v8, 0 }
 0x485   :  { %1570 = vmatmul.mubr.msk.bf16.vlgmr.msra.gmra.mxu1 %vm242_vm5, %v359_v10 }
 0x486   :  { %1580 = vmatpush3.bf16.xpose.msra.mxu1 %v468_v11  ;;  %1581 = vmatprep.mubr.msk.bf16.mxu1 %vm1767_vm0, %v1766_v2 }
 0x487   :  { %1591 = vmatprep.subr.bf16.mxu1 %v1766_v2 }
 0x488   :  { %v1719_v12 = vpop.eup %1718 }
 0x489   :  { %v358_v13 = vmul.f32 %v1719_v12, %v1715_v0 }
 0x48b   :  { %v360_v15 = vpack.c.bf16 %v358_v13, %v358_v13 }
 0x48d   :  { %1576 = vmatmul.mubr.msk.bf16.vlgmr.msra.gmra.mxu0 %vm242_vm5, %v360_v15  ;;  %1582 = vmatmul.mubr.msk.bf16.vlgmr.msra.gmra.mxu1 %vm242_vm5, %v461_v16 }
 0x48e   :  { %1586 = vmatpush3.bf16.xpose.msra.mxu0 %v518_v17  ;;  %1587 = vmatprep.mubr.msk.bf16.mxu0 %vm1767_vm0, %v1766_v2 }
 0x48f   :  { %1597 = vmatprep.subr.bf16.mxu0 %v1766_v2  ;;  %1593 = vmatprep.mubr.msk.bf16.mxu1 %vm1767_vm0, %v1766_v2 }
 0x495   :  { %1588 = vmatmul.mubr.msk.bf16.vlgmr.msra.gmra.mxu0 %vm242_vm5, %v511_v18 }
 0x496   :  { %1599 = vmatprep.mubr.msk.bf16.mxu0 %vm1767_vm0, %v1766_v2 }
 0x545   :  { %v1944_v19 = vpop.f32.mrf.mxu1 }
 0x547   :  { %v1571_v20 = vpop.f32.mrf.mxu1 }
 0x549   :  { %v407_v21 = vpop.f32.mrf.mxu1 }
 0x54b   :  { %v1572_v22 = vpop.f32.mrf.mxu1 }
 0x54d   :  { %v1946_v23 = vpop.f32.mrf.mxu0  ;;  %v504_v24 = vpop.f32.mrf.mxu1 }
 0x54e   :  { %v458_v25 = vpack.c.bf16 %v1946_v23, %v1944_v19  ;;  %v505_v26 = vadd.f32 %v504_v24, %v1908_v41 }
 0x54f   :  { %v1577_v27 = vpop.f32.mrf.mxu0  ;;  %v1583_v28 = vpop.f32.mrf.mxu1 }
 0x550   :  { %v560_v29 = vsel %vm242_vm5, %v505_v26, -inf }
 0x551   :  { %561 = vmax.xlane.f32.xlu0 %v560_v29  ;;  %v455_v30 = vpop.f32.mrf.mxu0  ;;  %v507_v32 = vpop.f32.mrf.mxu1 }
 0x553   :  { %v1578_v33 = vpop.f32.mrf.mxu0  ;;  %v1584_v35 = vpop.f32.mrf.mxu1 }
 0x555   :  { %v554_v36 = vpop.f32.mrf.mxu0 }
 0x556   :  { %v555_v37 = vadd.f32 %v554_v36, %v1908_v41 }
 0x557   :  { %v1589_v38 = vpop.f32.mrf.mxu0 }
 0x558   :  { %v563_v39 = vsel %vm242_vm5, %v555_v37, -inf }
 0x559   :  { %564 = vmax.xlane.f32.xlu1 %v563_v39  ;;  %v557_v40 = vpop.f32.mrf.mxu0 }
 0x55b   :  { %v1590_v42 = vpop.f32.mrf.mxu0 }
 0x56a   :  { %584 = vrot.lane.b32.xlu1 %v1889_v31, %s1774_s29 }
 0x56e   :  { %779 = vrot.lane.b32.xlu1 %v1889_v31, %s1775_s30 }
 0x572   :  { %829 = vrot.lane.b32.xlu1 %v1892_v34, %s1775_s30 }
 0x576   :  { %827 = vrot.lane.b32.xlu1 %v1892_v34, %s1776_s9 }
 0x5da   :  { %v562_v43 = vpop.xlane.xlu0 %561 }
 0x5db   :  { %v566_v44 = vsub.f32 %v505_v26, %v562_v43 }
 0x5dd   :  { %v568_v45 = vmul.f32 1.442695, %v566_v44 }
 0x5df   :  { %1720 = vpow2.f32 %v568_v45 }
 0x5e2   :  { %v565_v46 = vpop.xlane.xlu1 %564 }
 0x5e3   :  { %v567_v47 = vsub.f32 %v555_v37, %v565_v46 }
 0x5e5   :  { %v570_v48 = vmul.f32 1.442695, %v567_v47 }
 0x5e6   :  { %v585_v49 = vpop.permute.xlu1 %584 }
 0x5e7   :  { %1722 = vpow2.f32 %v570_v48  ;;  %v590_v50 = vsel %vm366_vm7, %v585_v49, 0 }
 0x5e8   :  { %1592 = vmatpush3.bf16.msra.mxu1 %v590_v50 }
 0x5e9   :  { %1603 = vmatprep.subr.bf16.mxu1 %v1766_v2 }
 0x5ea   :  { %v780_v4 = vpop.permute.xlu1 %779 }
 0x5eb   :  { %v785_v17 = vsel %vm242_vm5, %v780_v4, 0 }
 0x5ec   :  { %v1721_v51 = vpop.eup %1720 }
 0x5ed   :  { %v572_v52 = vsel %vm242_vm5, %v1721_v51, 0.0 }
 0x5ee   :  { %573 = vadd.xlane.f32.xlu0 %v572_v52  ;;  %v830_v5 = vpop.permute.xlu1 %829 }
 0x5ef   :  { %v835_v6 = vsel %vm242_vm5, %v830_v5, 0 }
 0x5f2   :  { %v828_v7 = vpop.permute.xlu1 %827 }
 0x5f4   :  { %v1723_v53 = vpop.eup %1722 }
 0x5f5   :  { %v575_v54 = vsel %vm242_vm5, %v1723_v53, 0.0 }
 0x5f6   :  { %576 = vadd.xlane.f32.xlu0 %v575_v54 }
 0x60c   :  { %632 = vrot.lane.b32.xlu0 %v1892_v34, %s1774_s29 }
 0x610   :  { %777 = vrot.lane.b32.xlu0 %v1889_v31, %s1776_s9 }
 0x677   :  { %v574_v55 = vpop.xlane.xlu0 %573 }
 0x678   :  { %1724 = vrcp.f32 %v574_v55 }
 0x67f   :  { %v577_v56 = vpop.xlane.xlu0 %576 }
 0x680   :  { %1726 = vrcp.f32 %v577_v56 }
 0x683   :  { %v633_v57 = vpop.permute.xlu0 %632 }
 0x684   :  { %v638_v58 = vsel %vm366_vm7, %v633_v57, 0 }
 0x685   :  { %v1725_v59 = vpop.eup %1724  ;;  %1598 = vmatpush3.bf16.msra.mxu0 %v638_v58 }
 0x686   :  { %v580_v60 = vmul.f32 %v1725_v59, %v1721_v51  ;;  %1609 = vmatprep.subr.bf16.mxu0 %v1766_v2 }
 0x687   :  { %v778_v21 = vpop.permute.xlu0 %777 }
 0x688   :  { %v582_v61 = vpack.c.bf16 %v580_v60, %v580_v60 }
 0x68a   :  { %1594 = vmatmul.mubr.msk.bf16.vlgmr.msra.gmra.mxu1 %vm242_vm5, %v582_v61 }
 0x68b   :  { %1605 = vmatprep.mubr.msk.bf16.mxu1 %vm1767_vm0, %v1766_v2  ;;  %1604 = vmatpush3.bf16.msra.mxu1 %v687_v9 }
 0x68c   :  { %1615 = vmatprep.subr.bf16.mxu1 %v1766_v2 }
 0x68d   :  { %v1727_v62 = vpop.eup %1726 }
 0x68e   :  { %v581_v0 = vmul.f32 %v1727_v62, %v1723_v53 }
 0x690   :  { %v583_v1 = vpack.c.bf16 %v581_v0, %v581_v0 }
 0x692   :  { %1600 = vmatmul.mubr.msk.bf16.vlgmr.msra.gmra.mxu0 %vm242_vm5, %v583_v1 }
 0x693   :  { %1610 = vmatpush3.bf16.msra.mxu0 %v734_v3  ;;  %1611 = vmatprep.mubr.msk.bf16.mxu0 %vm1767_vm0, %v1766_v2 }
 0x694   :  { %1621 = vmatprep.subr.bf16.mxu0 %v1766_v2 }
 0x69a   :  { %1612 = vmatmul.mubr.msk.bf16.vlgmr.msra.gmra.mxu0 %vm242_vm5, %v458_v25 }
 0x69b   :  { %1622 = vmatpush3.bf16.xpose.msra.mxu0 %v835_v6  ;;  %1623 = vmatprep.mubr.msk.bf16.mxu0 %vm1767_vm0, %v1766_v2  ;;  %v1449_v6 = vld [vmem:[%s2109_s4 + $0x8] sm:$0xf] }
 0x69c   :  { %1633 = vmatprep.subr.bf16.mxu0 %v1766_v2 }
 0x6a2   :  { %1624 = vmatmul.mubr.msk.bf16.vlgmr.msra.gmra.mxu0 %vm242_vm5, %v828_v7  ;;  %v1004_v7 = vsel %vm366_vm7, %v1449_v6, 0 }
 0x6a3   :  { %1635 = vmatprep.mubr.msk.bf16.mxu0 %vm1767_vm0, %v1766_v2 }
 0x74a   :  { %v626_v10 = vpop.f32.mrf.mxu1 }
 0x74c   :  { %v1595_v11 = vpop.f32.mrf.mxu1 }
 0x74e   :  { %v629_v12 = vpop.f32.mrf.mxu1 }
 0x750   :  { %v1596_v13 = vpop.f32.mrf.mxu1 }
 0x752   :  { %v674_v14 = vpop.f32.mrf.mxu0 }
 0x753   :  { %v680_v15 = vpack.c.bf16 %v674_v14, %v626_v10 }
 0x754   :  { %v1601_v16 = vpop.f32.mrf.mxu0 }
 0x755   :  { %1606 = vmatmul.mubr.msk.bf16.vlgmr.msra.gmra.mxu1 %vm242_vm5, %v680_v15 }
 0x756   :  { %1616 = vmatpush3.bf16.xpose.msra.mxu1 %v785_v17  ;;  %v677_v18 = vpop.f32.mrf.mxu0  ;;  %1617 = vmatprep.mubr.msk.bf16.mxu1 %vm1767_vm0, %v1766_v2 }
 0x757   :  { %1627 = vmatprep.subr.bf16.mxu1 %v1766_v2 }
 0x758   :  { %v1602_v19 = vpop.f32.mrf.mxu0 }
 0x75a   :  { %v1998_v20 = vpop.f32.mrf.mxu0 }
 0x75c   :  { %v1613_v22 = vpop.f32.mrf.mxu0 }
 0x75d   :  { %1618 = vmatmul.mubr.msk.bf16.vlgmr.msra.gmra.mxu1 %vm242_vm5, %v778_v21 }
 0x75e   :  { %v2001_v23 = vpop.f32.mrf.mxu0  ;;  %1629 = vmatprep.mubr.msk.bf16.mxu1 %vm1767_vm0, %v1766_v2 }
 0x760   :  { %v1614_v24 = vpop.f32.mrf.mxu0 }
 0x762   :  { %v871_v25 = vpop.f32.mrf.mxu0 }
 0x763   :  { %v872_v26 = vadd.f32 %v871_v25, %v1908_v41 }
 0x764   :  { %v1625_v27 = vpop.f32.mrf.mxu0 }
 0x765   :  { %v880_v28 = vsel %vm242_vm5, %v872_v26, -inf }
 0x766   :  { %881 = vmax.xlane.f32.xlu1 %v880_v28  ;;  %v874_v29 = vpop.f32.mrf.mxu0 }
 0x768   :  { %v1626_v30 = vpop.f32.mrf.mxu0 }
 0x777   :  { %901 = vrot.lane.b32.xlu1 %v1889_v31, %s1777_s13 }
 0x77b   :  { %1051 = vrot.lane.b32.xlu1 %v1889_v31, %s1778_s14 }
 0x77f   :  { %1101 = vrot.lane.b32.xlu1 %v1892_v34, %s1778_s14 }
 0x783   :  { %1099 = vrot.lane.b32.xlu1 %v1892_v34, %s1779_s15 }
 0x7ef   :  { %v882_v32 = vpop.xlane.xlu1 %881 }
 0x7f0   :  { %v884_v36 = vsub.f32 %v872_v26, %v882_v32 }
 0x7f2   :  { %v887_v37 = vmul.f32 1.442695, %v884_v36 }
 0x7f3   :  { %v902_v33 = vpop.permute.xlu1 %901 }
 0x7f4   :  { %v907_v35 = vsel %vm366_vm7, %v902_v33, 0  ;;  %1728 = vpow2.f32 %v887_v37 }
 0x7f5   :  { %1628 = vmatpush3.bf16.msra.mxu1 %v907_v35 }
 0x7f6   :  { %1639 = vmatprep.subr.bf16.mxu1 %v1766_v2 }
 0x7f7   :  { %v1052_v62 = vpop.permute.xlu1 %1051 }
 0x7f8   :  { %v1057_v0 = vsel %vm242_vm5, %v1052_v62, 0 }
 0x7fb   :  { %v1102_v13 = vpop.permute.xlu1 %1101 }
 0x7fc   :  { %v1107_v22 = vsel %vm242_vm5, %v1102_v13, 0 }
 0x7ff   :  { %v1100_v27 = vpop.permute.xlu1 %1099 }
 0x801   :  { %v1729_v47 = vpop.eup %1728 }
 0x802   :  { %v892_v50 = vsel %vm242_vm5, %v1729_v47, 0.0 }
 0x815   :  { %v2015_v38 = vpop.f32.mrf.mxu1 }
 0x816   :  { %v771_v35 = vadd.f32 %v1998_v20, %v2015_v38 }
 0x817   :  { %v1607_v39 = vpop.f32.mrf.mxu1 }
 0x819   :  { %v2017_v40 = vpop.f32.mrf.mxu1 }
 0x81b   :  { %v1608_v42 = vpop.f32.mrf.mxu1 }
 0x81c   :  { %v774_v42 = vadd.f32 %v2001_v23, %v2017_v40 }
 0x81d   :  { %v821_v43 = vpop.f32.mrf.mxu1 }
 0x81e   :  { %v822_v44 = vadd.f32 %v821_v43, %v1908_v41 }
 0x81f   :  { %v1619_v45 = vpop.f32.mrf.mxu1 }
 0x820   :  { %v877_v46 = vsel %vm242_vm5, %v822_v44, -inf }
 0x821   :  { %878 = vmax.xlane.f32.xlu0 %v877_v46  ;;  %v824_v48 = vpop.f32.mrf.mxu1 }
 0x823   :  { %v1620_v49 = vpop.f32.mrf.mxu1 }
 0x825   :  { %893 = vadd.xlane.f32.xlu0 %v892_v50 }
 0x8aa   :  { %v879_v51 = vpop.xlane.xlu0 %878 }
 0x8ab   :  { %v883_v52 = vsub.f32 %v822_v44, %v879_v51 }
 0x8ad   :  { %v885_v53 = vmul.f32 1.442695, %v883_v52 }
 0x8ae   :  { %v894_v56 = vpop.xlane.xlu0 %893 }
 0x8af   :  { %1730 = vpow2.f32 %v885_v53 }
 0x8b0   :  { %1732 = vrcp.f32 %v894_v56 }
 0x8bc   :  { %v1731_v54 = vpop.eup %1730 }
 0x8bd   :  { %v889_v55 = vsel %vm242_vm5, %v1731_v54, 0.0  ;;  %v1733_v57 = vpop.eup %1732 }
 0x8be   :  { %890 = vadd.xlane.f32.xlu0 %v889_v55  ;;  %v898_v59 = vmul.f32 %v1733_v57, %v1729_v47  ;;  %v1455_v57 = vld [vmem:[%s2109_s4 + $0xc] sm:$0xf] }
 0x8c0   :  { %v900_v63 = vpack.c.bf16 %v898_v59, %v898_v59 }
 0x8d4   :  { %949 = vrot.lane.b32.xlu0 %v1892_v34, %s1777_s13 }
 0x8d8   :  { %1049 = vrot.lane.b32.xlu0 %v1889_v31, %s1779_s15 }
 0x947   :  { %v891_v58 = vpop.xlane.xlu0 %890 }
 0x948   :  { %1734 = vrcp.f32 %v891_v58  ;;  %v1276_v58 = vsel %vm366_vm7, %v1455_v57, 0 }
 0x94b   :  { %v950_v60 = vpop.permute.xlu0 %949 }
 0x94c   :  { %v955_v61 = vsel %vm366_vm7, %v950_v60, 0 }
 0x94d   :  { %1634 = vmatpush3.bf16.msra.mxu0 %v955_v61 }
 0x94e   :  { %1645 = vmatprep.subr.bf16.mxu0 %v1766_v2 }
 0x94f   :  { %v1050_v4 = vpop.permute.xlu0 %1049 }
 0x950   :  { %1636 = vmatmul.mubr.msk.bf16.vlgmr.msra.gmra.mxu0 %vm242_vm5, %v900_v63 }
 0x951   :  { %1646 = vmatpush3.bf16.xpose.msra.mxu0 %v1057_v0  ;;  %1647 = vmatprep.mubr.msk.bf16.mxu0 %vm1767_vm0, %v1766_v2 }
 0x952   :  { %1657 = vmatprep.subr.bf16.mxu0 %v1766_v2 }
 0x955   :  { %v1735_v1 = vpop.eup %1734 }
 0x956   :  { %v897_v3 = vmul.f32 %v1735_v1, %v1731_v54 }
 0x958   :  { %1648 = vmatmul.mubr.msk.bf16.vlgmr.msra.gmra.mxu0 %vm242_vm5, %v1050_v4  ;;  %v899_v5 = vpack.c.bf16 %v897_v3, %v897_v3 }
 0x959   :  { %1659 = vmatprep.mubr.msk.bf16.mxu0 %vm1767_vm0, %v1766_v2 }
 0x95a   :  { %1630 = vmatmul.mubr.msk.bf16.vlgmr.msra.gmra.mxu1 %vm242_vm5, %v899_v5 }
 0x95b   :  { %1641 = vmatprep.mubr.msk.bf16.mxu1 %vm1767_vm0, %v1766_v2  ;;  %1640 = vmatpush3.bf16.msra.mxu1 %v1004_v7 }
 0x95c   :  { %1651 = vmatprep.subr.bf16.mxu1 %v1766_v2 }
 0xa10   :  { %v991_v8 = vpop.f32.mrf.mxu0 }
 0xa12   :  { %v1637_v9 = vpop.f32.mrf.mxu0 }
 0xa14   :  { %v994_v10 = vpop.f32.mrf.mxu0 }
 0xa15   :  { %v1710_v10 = vld [vmem:[%s2111_s6 + $0x8] sm:$0xff]  }
 0xa16   :  { %v1638_v11 = vpop.f32.mrf.mxu0 }
 0xa17   :  { %v1711_v11 = vld [vmem:[%s2111_s6] sm:$0xff]  }
 0xa18   :  { %v1093_v12 = vpop.f32.mrf.mxu0 }
 0xa19   :  { %v1094_v14 = vadd.f32 %v1093_v12, %v1908_v41 }
 0xa1a   :  { %v943_v15 = vpop.f32.mrf.mxu1  ;;  %v1649_v16 = vpop.f32.mrf.mxu0 }
 0xa1b   :  { %v997_v17 = vpack.c.bf16 %v991_v8, %v943_v15  ;;  %v1149_v18 = vsel %vm242_vm5, %v1094_v14, -inf }
 0xa1c   :  { %v1631_v19 = vpop.f32.mrf.mxu1  ;;  %1150 = vmax.xlane.f32.xlu0 %v1149_v18  ;;  %v1096_v21 = vpop.f32.mrf.mxu0 }
 0xa1d   :  { %1642 = vmatmul.mubr.msk.bf16.vlgmr.msra.gmra.mxu1 %vm242_vm5, %v997_v17 }
 0xa1e   :  { %1652 = vmatpush3.bf16.xpose.msra.mxu1 %v1107_v22  ;;  %v946_v24 = vpop.f32.mrf.mxu1  ;;  %v1650_v25 = vpop.f32.mrf.mxu0  ;;  %1653 = vmatprep.mubr.msk.bf16.mxu1 %vm1767_vm0, %v1766_v2 }
 0xa1f   :  { %1663 = vmatprep.subr.bf16.mxu1 %v1766_v2 }
 0xa20   :  { %v1632_v26 = vpop.f32.mrf.mxu1 }
 0xa21   :  { %v1458_v26 = vld [vmem:[%s2112_s7] ss:$0 sm:$0xff] }
 0xa25   :  { %1654 = vmatmul.mubr.msk.bf16.vlgmr.msra.gmra.mxu1 %vm242_vm5, %v1100_v27 }
 0xa26   :  { %1665 = vmatprep.mubr.msk.bf16.mxu1 %vm1767_vm0, %v1766_v2 }
 0xaa5   :  { %v1151_v28 = vpop.xlane.xlu0 %1150 }
 0xaa6   :  { %v1155_v29 = vsub.f32 %v1094_v14, %v1151_v28  ;;  %v1457_v14 = vld [vmem:[%s2110_s5] ss:$0 sm:$0xff]  ;;  %s1781_s5 = smov [#allocation2]  }
 0xaa7   :  { %s1409_s26 = sshll.u32 %s1781_s5, 4  ;;  %s1410_s26 = int_to_ptr.vmem [resolvable:$true] %s1409_s26 }
 0xaa8   :  { %v1157_v30 = vmul.f32 1.442695, %v1155_v29  ;;  %s1744_s3 = scalar_lea.vmem %s1410_s26, 128  ;;  %p1749_p1 = scmp.lt.s32.totalorder %s1410_s26, %s1410_s26 }
 0xaa9   :  { %p1745_p0 = scmp.ne.s32.totalorder %s1410_s26, %s1744_s3  ;;  %p1750_p2 = scmp.lt.s32.totalorder %s1744_s3, %s1744_s3 }
 0xaaa   :  { %1736 = vpow2.f32 %v1157_v30 }
 0xaab   :  { %p1751_p3 = por %p1750_p2, %p1749_p1 }
 0xaad   :  { %p1752_p4 = pnand %p1751_p3, %p1745_p0 }
 0xab7   :  { %v1737_v32 = vpop.eup %1736 }
 0xab8   :  { %v1161_v33 = vsel %vm242_vm5, %v1737_v32, 0.0 }
 0xab9   :  { %1162 = vadd.xlane.f32.xlu0 %v1161_v33 }
 0xadd   :  { %v1040_v36 = vpop.f32.mrf.mxu1 }
 0xade   :  { %v2058_v37 = vadd.f32 %v1040_v36, %v771_v35 }
 0xadf   :  { %v1643_v39 = vpop.f32.mrf.mxu1 }
 0xae1   :  { %v1043_v43 = vpop.f32.mrf.mxu1 }
 0xae2   :  { %v2062_v44 = vadd.f32 %v1043_v43, %v774_v42 }
 0xae3   :  { %v1644_v45 = vpop.f32.mrf.mxu1 }
 0xae5   :  { %v1143_v46 = vpop.f32.mrf.mxu1 }
 0xae6   :  { %v1144_v47 = vadd.f32 %v1143_v46, %v1908_v41 }
 0xae7   :  { %v1655_v48 = vpop.f32.mrf.mxu1 }
 0xae8   :  { %v1152_v49 = vsel %vm242_vm5, %v1144_v47, -inf }
 0xae9   :  { %1153 = vmax.xlane.f32.xlu1 %v1152_v49  ;;  %v1146_v50 = vpop.f32.mrf.mxu1 }
 0xaeb   :  { %v1656_v20 = vpop.f32.mrf.mxu1 }
 0xafa   :  { %1173 = vrot.lane.b32.xlu1 %v1889_v31, %s1780_s18 }
 0xb42   :  { %v1163_v38 = vpop.xlane.xlu0 %1162 }
 0xb43   :  { %1738 = vrcp.f32 %v1163_v38 }
 0xb50   :  { %v1739_v51 = vpop.eup %1738 }
 0xb51   :  { %v1169_v53 = vmul.f32 %v1739_v51, %v1737_v32 }
 0xb53   :  { %v1171_v55 = vpack.c.bf16 %v1169_v53, %v1169_v53 }
 0xb72   :  { %v1154_v23 = vpop.xlane.xlu1 %1153 }
 0xb73   :  { %v1156_v40 = vsub.f32 %v1144_v47, %v1154_v23 }
 0xb75   :  { %v1159_v52 = vmul.f32 1.442695, %v1156_v40 }
 0xb76   :  { %v1174_v54 = vpop.permute.xlu1 %1173 }
 0xb77   :  { %1740 = vpow2.f32 %v1159_v52  ;;  %v1179_v41 = vsel %vm366_vm7, %v1174_v54, 0 }
 0xb78   :  { %1658 = vmatpush3.bf16.msra.mxu0 %v1179_v41 }
 0xb79   :  { %1669 = vmatprep.subr.bf16.mxu0 %v1766_v2 }
 0xb7b   :  { %1660 = vmatmul.mubr.msk.bf16.vlgmr.msra.gmra.mxu0 %vm242_vm5, %v1171_v55 }
 0xb7c   :  { %1671 = vmatprep.mubr.msk.bf16.mxu0 %vm1767_vm0, %v1766_v2  ;;  %1670 = vmatpush3.bf16.msra.mxu0 %v1276_v58 }
 0xb84   :  { %v1741_v31 = vpop.eup %1740 }
 0xb85   :  { %v1164_v56 = vsel %vm242_vm5, %v1741_v31, 0.0 }
 0xb86   :  { %1165 = vadd.xlane.f32.xlu0 %v1164_v56 }
 0xb9c   :  { %1221 = vrot.lane.b32.xlu0 %v1892_v34, %s1780_s18 }
 0xc0f   :  { %v1166_v59 = vpop.xlane.xlu0 %1165 }
 0xc10   :  { %1742 = vrcp.f32 %v1166_v59 }
 0xc13   :  { %v1222_v60 = vpop.permute.xlu0 %1221 }
 0xc14   :  { %v1227_v61 = vsel %vm366_vm7, %v1222_v60, 0 }
 0xc15   :  { %1664 = vmatpush3.bf16.msra.mxu1 %v1227_v61 }
 0xc16   :  { %1675 = vmatprep.subr.bf16.mxu1 %v1766_v2 }
 0xc1d   :  { %v1743_v62 = vpop.eup %1742 }
 0xc1e   :  { %v1170_v63 = vmul.f32 %v1743_v62, %v1741_v31 }
 0xc20   :  { %v1172_v0 = vpack.c.bf16 %v1170_v63, %v1170_v63 }
 0xc22   :  { %1666 = vmatmul.mubr.msk.bf16.vlgmr.msra.gmra.mxu1 %vm242_vm5, %v1172_v0 }
 0xc23   :  { %1679 = vmatprep.mubr.msk.bf16.mxu1 %vm1767_vm0, %v1766_v2  ;;  %1676 = vmatpush3.bf16.msra.mxu1 %v1710_v10 }
 0xc24   :  { %1677 = vmatprep.subr.bf16.mxu1 %v1766_v2 }
 0xc27   :  { %1678 = vmatpush3.bf16.msra.mxu1 %v1711_v11 }
 0xc3b   :  { %v1215_v34 = vpop.f32.mrf.mxu0 }
 0xc3d   :  { %v1661_v1 = vpop.f32.mrf.mxu0 }
 0xc3f   :  { %v1218_v3 = vpop.f32.mrf.mxu0 }
 0xc41   :  { %v1662_v4 = vpop.f32.mrf.mxu0 }
 0xce2   :  { %v1263_v5 = vpop.f32.mrf.mxu1 }
 0xce3   :  { %v1269_v6 = vpack.c.bf16 %v1263_v5, %v1215_v34 }
 0xce4   :  { %v1667_v7 = vpop.f32.mrf.mxu1 }
 0xce5   :  { %1672 = vmatmul.mubr.msk.bf16.vlgmr.msra.gmra.mxu0 %vm242_vm5, %v1269_v6 }
 0xce6   :  { %v1266_v8 = vpop.f32.mrf.mxu1 }
 0xce8   :  { %v1668_v9 = vpop.f32.mrf.mxu1 }
 0xda5   :  { %v1312_v12 = vpop.f32.mrf.mxu0 }
 0xda6   :  { %v1319_v13 = vadd.f32 %v1312_v12, %v2058_v37 }
 0xda7   :  { %v1673_v15 = vpop.f32.mrf.mxu0 }
 0xda8   :  { %v1328_v17 = vadd.f32 %v1457_v14, %v1319_v13 }
 0xda9   :  { %v1315_v16 = vpop.f32.mrf.mxu0 }
 0xdaa   :  { %v1320_v18 = vadd.f32 %v1315_v16, %v2062_v44  ;;  %v1330_v2 = vmax.f32 %v1328_v17, 0.0 }
 0xdab   :  { %v1674_v19 = vpop.f32.mrf.mxu0 }
 0xdac   :  { %v1329_v21 = vadd.f32 %v1457_v14, %v1320_v18 }
 0xdae   :  { %v1331_v22 = vmax.f32 %v1329_v21, 0.0 }
 0xdb0   :  { %v1332_v24 = vpack.c.bf16 %v1331_v22, %v1330_v2 }
 0xdb2   :  { %1680 = vmatmul.mubr.msk.bf16.vlgmr.msra.gmra.mxu1 %vm185_vm4, %v1332_v24 }
 0xe72   :  { %v1393_v25 = vpop.f32.mrf.mxu1 }
 0xe73   :  { %v1394_v29 = vadd.f32 %v1458_v26, %v1393_v25 }
 0xe74   :  { %v1681_v27 = vpop.f32.mrf.mxu1 }
 0xe76   :  { %v1396_v28 = vpop.f32.mrf.mxu1 }
 0xe77   :  { %v1397_v30 = vadd.f32 %v1458_v26, %v1396_v28 }
 0xe78   :  { %v1682_v32 = vpop.f32.mrf.mxu1 }
 0xe79   :  { %v1470_v33 = vpack.c.bf16 %v1397_v30, %v1394_v29 }
 0xe7b   :  { %1471 = vst [vmem:[#allocation2] sm:$0xff] %v1470_v33  }
 0xe7c   :  { %1755 = shalt.err (!%p1752_p4)
}
 0xe7d   :  { %s1782_s27 = smov 4  }
 0xe7e   :  { %1415 = dma.vmem_to_hbm [thread:$0]  %s1410_s26, 128, %s2113_s8, [#allocation3], %s1771_s1, %s1771_s1, %s1782_s27  }
 0xe7f   :  { %1764 = dma.done.wait [#allocation3], 128  }
 0xe80   :  { %1765 = vsyncadd [#allocation3], 4294967168 }
 0xe81   :  { %1419 = vsyncpa [#allocation3], 1 }

</bundles_post_ra>
